<compile_context>
chip_gen: v5e
topology: v5e:2x2
jax: 0.10.0
libtpu: 0.0.40
codegen_flags: <defaults>
</compile_context>

<pallas_src>
import functools

import jax
import jax.numpy as jnp
from jax.experimental import pallas as pl
from jax.experimental.pallas import tpu as pltpu


def _round_up(x, m):
    return (x + m - 1) // m * m


def _mlp_kernel(x_ref, w13_ref, u13_ref, v13_ref, w2_ref, v2_ref, u2_ref,
                o_ref, xv_scr, out_acc, hv2_acc, *, ti, r_pad):
    j = pl.program_id(1)
    nj = pl.num_programs(1)

    @pl.when(j == 0)
    def _init():
        # x @ [V1 | V3] is independent of the I tile -> compute once per token
        # tile and cache it in VMEM scratch (bf16, matching the module's
        # per-linear bf16 outputs that feed the next matmul).
        xv = jnp.dot(x_ref[...], v13_ref[...],
                     preferred_element_type=jnp.float32)
        xv_scr[...] = xv.astype(jnp.bfloat16)
        out_acc[...] = jnp.zeros_like(out_acc)
        hv2_acc[...] = jnp.zeros_like(hv2_acc)

    x = x_ref[...]                      # (tt, Hp) bf16
    xv1 = xv_scr[:, :r_pad]             # (tt, Rp) bf16
    xv3 = xv_scr[:, r_pad:]             # (tt, Rp) bf16

    # Fused first layer over this I tile: columns [0,ti) -> gate, [ti,2ti) -> up
    gu = jnp.dot(x, w13_ref[...], preferred_element_type=jnp.float32)  # (tt,2ti)
    gate = gu[:, :ti] + jnp.dot(xv1, u13_ref[:, :ti],
                                preferred_element_type=jnp.float32)
    up = gu[:, ti:] + jnp.dot(xv3, u13_ref[:, ti:],
                              preferred_element_type=jnp.float32)

    # silu(gate) * up kept in f32, single bf16 cast before the 2nd-layer MXU.
    h = (gate * jax.nn.sigmoid(gate)) * up
    h_bf = h.astype(jnp.bfloat16)

    out_acc[...] += jnp.dot(h_bf, w2_ref[...],
                            preferred_element_type=jnp.float32)
    hv2_acc[...] += jnp.dot(h_bf, v2_ref[...],
                            preferred_element_type=jnp.float32)

    @pl.when(j == nj - 1)
    def _finalize():
        res = out_acc[...] + jnp.dot(hv2_acc[...].astype(jnp.bfloat16),
                                     u2_ref[...],
                                     preferred_element_type=jnp.float32)
        o_ref[...] = res.astype(o_ref.dtype)


def meanw_deltauv_forward(x, w1, w2, w3, u1, v1, u2, v2, u3, v3,
                          *, tile_t=256, tile_i=512):
    """x: (T, H) bf16; weights stored as (in_features, out_features).

    Returns (T, H) bf16.
    """
    assert tile_t % 16 == 0 and tile_i % 128 == 0
    T, H = x.shape
    I = w1.shape[1]
    R = v1.shape[1]

    # Padded / tiled sizes (zero padding is exactly semantics-preserving).
    Hp = _round_up(H, 128)
    Rp = _round_up(R, 128)
    ti = min(tile_i, _round_up(I, 128))
    Ip = _round_up(I, ti)
    tt = min(tile_t, _round_up(T, 16))
    Tp = _round_up(T, tt)
    nt, nj = Tp // tt, Ip // ti

    bf16 = jnp.bfloat16

    def pad2(a, r, c):
        return jnp.pad(a.astype(bf16),
                       ((0, r - a.shape[0]), (0, c - a.shape[1])))

    xp = pad2(x, Tp, Hp)
    w1p, w3p = pad2(w1, Hp, Ip), pad2(w3, Hp, Ip)
    u1p, u3p = pad2(u1, Rp, Ip), pad2(u3, Rp, Ip)
    v13 = jnp.concatenate([pad2(v1, Hp, Rp), pad2(v3, Hp, Rp)], axis=1)
    w2p = pad2(w2, Ip, Hp)
    v2p = pad2(v2, Ip, Rp)
    u2p = pad2(u2, Rp, Hp)

    def interleave(a, b):
        # (K, Ip) x 2 -> (K, 2*Ip) where column block j (width 2*ti) holds
        # [a[:, j*ti:(j+1)*ti] | b[:, j*ti:(j+1)*ti]].
        K = a.shape[0]
        st = jnp.stack([a.reshape(K, nj, ti), b.reshape(K, nj, ti)], axis=2)
        return st.reshape(K, 2 * Ip)

    w13 = interleave(w1p, w3p)   # (Hp, 2*Ip)
    u13 = interleave(u1p, u3p)   # (Rp, 2*Ip)

    # Rough VMEM budget (double-buffered input/output blocks + scratch).
    blk_bytes = 2 * (tt * Hp + Hp * 2 * ti + Rp * 2 * ti + Hp * 2 * Rp
                     + ti * Hp + ti * Rp + Rp * Hp + tt * Hp)
    scratch_bytes = tt * 2 * Rp * 2 + tt * Hp * 4 + tt * Rp * 4
    vmem_limit = max(32 * 1024 * 1024,
                     int(1.25 * (2 * blk_bytes + scratch_bytes)) + (1 << 20))

    flops = 2 * Tp * (Hp * 2 * Ip + Hp * 2 * Rp + Rp * 2 * Ip
                      + Ip * Hp + Ip * Rp + Rp * Hp)
    bytes_accessed = 2 * (2 * Tp * Hp + 2 * Hp * Ip + 2 * Rp * Ip
                          + 2 * Hp * Rp + Ip * Hp + Ip * Rp + Rp * Hp)

    kernel = functools.partial(_mlp_kernel, ti=ti, r_pad=Rp)

    out = pl.pallas_call(
        kernel,
        out_shape=jax.ShapeDtypeStruct((Tp, Hp), jnp.bfloat16),
        grid_spec=pltpu.PrefetchScalarGridSpec(
            num_scalar_prefetch=0,
            grid=(nt, nj),
            in_specs=[
                pl.BlockSpec((tt, Hp), lambda t, j: (t, 0)),        # x
                pl.BlockSpec((Hp, 2 * ti), lambda t, j: (0, j)),    # [W1|W3] tile
                pl.BlockSpec((Rp, 2 * ti), lambda t, j: (0, j)),    # [U1|U3] tile
                pl.BlockSpec((Hp, 2 * Rp), lambda t, j: (0, 0)),    # [V1|V3]
                pl.BlockSpec((ti, Hp), lambda t, j: (j, 0)),        # W2 rows
                pl.BlockSpec((ti, Rp), lambda t, j: (j, 0)),        # V2 rows
                pl.BlockSpec((Rp, Hp), lambda t, j: (0, 0)),        # U2
            ],
            out_specs=pl.BlockSpec((tt, Hp), lambda t, j: (t, 0)),
            scratch_shapes=[
                pltpu.VMEM((tt, 2 * Rp), jnp.bfloat16),   # cached x@[V1|V3]
                pltpu.VMEM((tt, Hp), jnp.float32),        # out accumulator
                pltpu.VMEM((tt, Rp), jnp.float32),        # h@V2 accumulator
            ],
        ),
        compiler_params=pltpu.CompilerParams(
            dimension_semantics=("parallel", "arbitrary"),
            vmem_limit_bytes=vmem_limit,
        ),
        cost_estimate=pl.CostEstimate(
            flops=flops, transcendentals=Tp * Ip,
            bytes_accessed=bytes_accessed),
    )(xp, w13, u13, v13, w2p, v2p, u2p)

    return out[:T, :H]


def _reference(x, w1, w2, w3, u1, v1, u2, v2, u3, v3):
    f32 = jnp.float32
    lin = lambda a, w: (a.astype(f32) @ w.astype(f32)).astype(jnp.bfloat16)
    up = lin(x, w3) + lin(lin(x, v3), u3)
    gate = lin(x, w1) + lin(lin(x, v1), u1)
    g32 = gate.astype(f32)
    h = (g32 * jax.nn.sigmoid(g32)).astype(jnp.bfloat16) * up
    return lin(h, w2) + lin(lin(h, v2), u2)


if __name__ == "__main__":
    # Small config consistent with the module: hidden=32, intermediate=256,
    # delta_ratio=1 -> delta_low_rank = int(256*32 / (256+32)) = 28.
    B, S = 2, 16
    hidden_dim = 32
    intermediate_dim = 256
    delta_ratio = 1.0
    delta_low_rank = int(intermediate_dim * hidden_dim * delta_ratio
                         / (intermediate_dim + hidden_dim))

    key = jax.random.PRNGKey(0)
    ks = jax.random.split(key, 10)
    init = lambda k, shape: (0.02 * jax.random.normal(k, shape, jnp.float32)
                             ).astype(jnp.bfloat16)

    # weights stored as (in_features, out_features) == nn.Linear weight.T
    Wmean1 = init(ks[0], (hidden_dim, intermediate_dim))
    Wmean2 = init(ks[1], (intermediate_dim, hidden_dim))
    Wmean3 = init(ks[2], (hidden_dim, intermediate_dim))
    delta_u1 = init(ks[3], (delta_low_rank, intermediate_dim))
    delta_v1 = init(ks[4], (hidden_dim, delta_low_rank))
    delta_u2 = init(ks[5], (delta_low_rank, hidden_dim))
    delta_v2 = init(ks[6], (intermediate_dim, delta_low_rank))
    delta_u3 = init(ks[7], (delta_low_rank, intermediate_dim))
    delta_v3 = init(ks[8], (hidden_dim, delta_low_rank))

    hidden_states = init(ks[9], (B, S, hidden_dim))

    x = hidden_states.reshape(B * S, hidden_dim)
    # tile_t=16 / tile_i=128 -> grid (2 parallel, 2 arbitrary) at toy size,
    # exercising both the token tiling and the streamed-I accumulation path.
    out = meanw_deltauv_forward(x, Wmean1, Wmean2, Wmean3,
                                delta_u1, delta_v1, delta_u2, delta_v2,
                                delta_u3, delta_v3,
                                tile_t=16, tile_i=128)
    out = out.reshape(B, S, hidden_dim)
    jax.block_until_ready(out)

    ref = _reference(x, Wmean1, Wmean2, Wmean3,
                     delta_u1, delta_v1, delta_u2, delta_v2,
                     delta_u3, delta_v3).reshape(B, S, hidden_dim)
    assert out.shape == (B, S, hidden_dim) and out.dtype == jnp.bfloat16
    assert jnp.allclose(out.astype(jnp.float32), ref.astype(jnp.float32),
                        atol=2e-2, rtol=2e-2)
    print("KERNEL_OK")
</pallas_src>

<mosaic_0001>
module attributes {stable_mosaic.version = 11 : i64} {
  func.func @_mlp_kernel(%arg0: i32, %arg1: i32, %arg2: memref<16x128xbf16, #tpu.memory_space<vmem>>, %arg3: memref<128x256xbf16, #tpu.memory_space<vmem>>, %arg4: memref<128x256xbf16, #tpu.memory_space<vmem>>, %arg5: memref<128x256xbf16, #tpu.memory_space<vmem>>, %arg6: memref<128x128xbf16, #tpu.memory_space<vmem>>, %arg7: memref<128x128xbf16, #tpu.memory_space<vmem>>, %arg8: memref<128x128xbf16, #tpu.memory_space<vmem>>, %arg9: memref<16x128xbf16, #tpu.memory_space<vmem>>, %arg10: memref<16x256xbf16, #tpu.memory_space<vmem>>, %arg11: memref<16x128xf32, #tpu.memory_space<vmem>>, %arg12: memref<16x128xf32, #tpu.memory_space<vmem>>) attributes {dimension_semantics = [#tpu.dimension_semantics<parallel>, #tpu.dimension_semantics<arbitrary>], iteration_bounds = array<i64: 2, 2>, scalar_prefetch = 0 : i64, scratch_operands = 3 : i64, tpu.core_type = #tpu.core_type<tc>, window_params = [{transform_indices = @transform_0, window_bounds = array<i64: 16, 128>}, {transform_indices = @transform_1, window_bounds = array<i64: 128, 256>}, {transform_indices = @transform_2, window_bounds = array<i64: 128, 256>}, {pipeline_mode = #tpu.pipeline_mode<synchronous>, transform_indices = @transform_3, window_bounds = array<i64: 128, 256>}, {transform_indices = @transform_4, window_bounds = array<i64: 128, 128>}, {transform_indices = @transform_5, window_bounds = array<i64: 128, 128>}, {pipeline_mode = #tpu.pipeline_mode<synchronous>, transform_indices = @transform_6, window_bounds = array<i64: 128, 128>}, {transform_indices = @transform_7, window_bounds = array<i64: 16, 128>}]} {
    %c0_i32 = arith.constant 0 : i32
    %0 = arith.cmpi eq, %arg1, %c0_i32 : i32
    %1 = arith.extui %0 : i1 to i32
    %c0_i32_0 = arith.constant 0 : i32
    %2 = arith.cmpi ne, %1, %c0_i32_0 : i32
    scf.if %2 {
      %c0_29 = arith.constant 0 : index
      %c0_30 = arith.constant 0 : index
      %37 = vector.load %arg2[%c0_29, %c0_30] : memref<16x128xbf16, #tpu.memory_space<vmem>>, vector<16x128xbf16>
      %c0_31 = arith.constant 0 : index
      %c0_32 = arith.constant 0 : index
      %38 = vector.load %arg5[%c0_31, %c0_32] : memref<128x256xbf16, #tpu.memory_space<vmem>>, vector<128x256xbf16>
      %cst_33 = arith.constant dense<0.000000e+00> : vector<16x256xf32>
      %39 = tpu.matmul %37, %38, %cst_33 {dimension_numbers = #tpu.dot_dimension_numbers<[1], [0], [0], [1], [0, 0, 1, 1], [], []>} : vector<16x128xbf16>, vector<128x256xbf16>, vector<16x256xf32> -> vector<16x256xf32>
      %40 = arith.truncf %39 : vector<16x256xf32> to vector<16x256xbf16>
      %c0_34 = arith.constant 0 : index
      %c0_35 = arith.constant 0 : index
      %41 = vector.load %arg10[%c0_34, %c0_35] : memref<16x256xbf16, #tpu.memory_space<vmem>>, vector<16x256xbf16>
      tpu.vector_store %arg10[%c0_34, %c0_35], %40 {strides = array<i32>} : memref<16x256xbf16, #tpu.memory_space<vmem>>, vector<16x256xbf16>,
      %cst_36 = arith.constant 0.000000e+00 : f32
      %42 = vector.broadcast %cst_36 : f32 to vector<16x128xf32>
      %c0_37 = arith.constant 0 : index
      %c0_38 = arith.constant 0 : index
      %43 = vector.load %arg11[%c0_37, %c0_38] : memref<16x128xf32, #tpu.memory_space<vmem>>, vector<16x128xf32>
      tpu.vector_store %arg11[%c0_37, %c0_38], %42 {strides = array<i32>} : memref<16x128xf32, #tpu.memory_space<vmem>>, vector<16x128xf32>,
      %cst_39 = arith.constant 0.000000e+00 : f32
      %44 = vector.broadcast %cst_39 : f32 to vector<16x128xf32>
      %c0_40 = arith.constant 0 : index
      %c0_41 = arith.constant 0 : index
      %45 = vector.load %arg12[%c0_40, %c0_41] : memref<16x128xf32, #tpu.memory_space<vmem>>, vector<16x128xf32>
      tpu.vector_store %arg12[%c0_40, %c0_41], %44 {strides = array<i32>} : memref<16x128xf32, #tpu.memory_space<vmem>>, vector<16x128xf32>,
    } else {
    }
    %c0 = arith.constant 0 : index
    %c0_1 = arith.constant 0 : index
    %3 = vector.load %arg2[%c0, %c0_1] : memref<16x128xbf16, #tpu.memory_space<vmem>>, vector<16x128xbf16>
    %c0_2 = arith.constant 0 : index
    %c0_3 = arith.constant 0 : index
    %4 = vector.load %arg10[%c0_2, %c0_3] : memref<16x256xbf16, #tpu.memory_space<vmem>>, vector<16x128xbf16>
    %c0_4 = arith.constant 0 : index
    %c128 = arith.constant 128 : index
    %5 = vector.load %arg10[%c0_4, %c128] : memref<16x256xbf16, #tpu.memory_space<vmem>>, vector<16x128xbf16>
    %c0_5 = arith.constant 0 : index
    %c0_6 = arith.constant 0 : index
    %6 = vector.load %arg3[%c0_5, %c0_6] : memref<128x256xbf16, #tpu.memory_space<vmem>>, vector<128x256xbf16>
    %cst = arith.constant dense<0.000000e+00> : vector<16x256xf32>
    %7 = tpu.matmul %3, %6, %cst {dimension_numbers = #tpu.dot_dimension_numbers<[1], [0], [0], [1], [0, 0, 1, 1], [], []>} : vector<16x128xbf16>, vector<128x256xbf16>, vector<16x256xf32> -> vector<16x256xf32>
    %8 = vector.extract_strided_slice %7 {offsets = [0, 0], sizes = [16, 128], strides = [1, 1]} : vector<16x256xf32> to vector<16x128xf32>
    %c0_7 = arith.constant 0 : index
    %c0_8 = arith.constant 0 : index
    %9 = vector.load %arg4[%c0_7, %c0_8] : memref<128x256xbf16, #tpu.memory_space<vmem>>, vector<128x128xbf16>
    %cst_9 = arith.constant dense<0.000000e+00> : vector<16x128xf32>
    %10 = tpu.matmul %4, %9, %cst_9 {dimension_numbers = #tpu.dot_dimension_numbers<[1], [0], [0], [1], [0, 0, 1, 1], [], []>} : vector<16x128xbf16>, vector<128x128xbf16>, vector<16x128xf32> -> vector<16x128xf32>
    %11 = arith.addf %8, %10 : vector<16x128xf32>
    %12 = vector.extract_strided_slice %7 {offsets = [0, 128], sizes = [16, 128], strides = [1, 1]} : vector<16x256xf32> to vector<16x128xf32>
    %c0_10 = arith.constant 0 : index
    %c128_11 = arith.constant 128 : index
    %13 = vector.load %arg4[%c0_10, %c128_11] : memref<128x256xbf16, #tpu.memory_space<vmem>>, vector<128x128xbf16>
    %cst_12 = arith.constant dense<0.000000e+00> : vector<16x128xf32>
    %14 = tpu.matmul %5, %13, %cst_12 {dimension_numbers = #tpu.dot_dimension_numbers<[1], [0], [0], [1], [0, 0, 1, 1], [], []>} : vector<16x128xbf16>, vector<128x128xbf16>, vector<16x128xf32> -> vector<16x128xf32>
    %15 = arith.addf %12, %14 : vector<16x128xf32>
    %16 = arith.negf %11 : vector<16x128xf32>
    %17 = math.exp %16 : vector<16x128xf32>
    %cst_13 = arith.constant 1.000000e+00 : f32
    %18 = vector.broadcast %cst_13 : f32 to vector<16x128xf32>
    %19 = arith.addf %18, %17 : vector<16x128xf32>
    %20 = arith.divf %18, %19 : vector<16x128xf32>
    %21 = arith.mulf %11, %20 : vector<16x128xf32>
    %22 = arith.mulf %21, %15 : vector<16x128xf32>
    %23 = arith.truncf %22 : vector<16x128xf32> to vector<16x128xbf16>
    %c0_14 = arith.constant 0 : index
    %c0_15 = arith.constant 0 : index
    %24 = vector.load %arg11[%c0_14, %c0_15] : memref<16x128xf32, #tpu.memory_space<vmem>>, vector<16x128xf32>
    %c0_16 = arith.constant 0 : index
    %c0_17 = arith.constant 0 : index
    %25 = vector.load %arg6[%c0_16, %c0_17] : memref<128x128xbf16, #tpu.memory_space<vmem>>, vector<128x128xbf16>
    %cst_18 = arith.constant dense<0.000000e+00> : vector<16x128xf32>
    %26 = tpu.matmul %23, %25, %cst_18 {dimension_numbers = #tpu.dot_dimension_numbers<[1], [0], [0], [1], [0, 0, 1, 1], [], []>} : vector<16x128xbf16>, vector<128x128xbf16>, vector<16x128xf32> -> vector<16x128xf32>
    %27 = arith.addf %24, %26 : vector<16x128xf32>
    %c0_19 = arith.constant 0 : index
    %c0_20 = arith.constant 0 : index
    %28 = vector.load %arg11[%c0_19, %c0_20] : memref<16x128xf32, #tpu.memory_space<vmem>>, vector<16x128xf32>
    tpu.vector_store %arg11[%c0_19, %c0_20], %27 {strides = array<i32>} : memref<16x128xf32, #tpu.memory_space<vmem>>, vector<16x128xf32>,
    %c0_21 = arith.constant 0 : index
    %c0_22 = arith.constant 0 : index
    %29 = vector.load %arg12[%c0_21, %c0_22] : memref<16x128xf32, #tpu.memory_space<vmem>>, vector<16x128xf32>
    %c0_23 = arith.constant 0 : index
    %c0_24 = arith.constant 0 : index
    %30 = vector.load %arg7[%c0_23, %c0_24] : memref<128x128xbf16, #tpu.memory_space<vmem>>, vector<128x128xbf16>
    %cst_25 = arith.constant dense<0.000000e+00> : vector<16x128xf32>
    %31 = tpu.matmul %23, %30, %cst_25 {dimension_numbers = #tpu.dot_dimension_numbers<[1], [0], [0], [1], [0, 0, 1, 1], [], []>} : vector<16x128xbf16>, vector<128x128xbf16>, vector<16x128xf32> -> vector<16x128xf32>
    %32 = arith.addf %29, %31 : vector<16x128xf32>
    %c0_26 = arith.constant 0 : index
    %c0_27 = arith.constant 0 : index
    %33 = vector.load %arg12[%c0_26, %c0_27] : memref<16x128xf32, #tpu.memory_space<vmem>>, vector<16x128xf32>
    tpu.vector_store %arg12[%c0_26, %c0_27], %32 {strides = array<i32>} : memref<16x128xf32, #tpu.memory_space<vmem>>, vector<16x128xf32>,
    %c1_i32 = arith.constant 1 : i32
    %34 = arith.cmpi eq, %arg1, %c1_i32 : i32
    %35 = arith.extui %34 : i1 to i32
    %c0_i32_28 = arith.constant 0 : i32
    %36 = arith.cmpi ne, %35, %c0_i32_28 : i32
    scf.if %36 {
      %c0_29 = arith.constant 0 : index
      %c0_30 = arith.constant 0 : index
      %37 = vector.load %arg11[%c0_29, %c0_30] : memref<16x128xf32, #tpu.memory_space<vmem>>, vector<16x128xf32>
      %c0_31 = arith.constant 0 : index
      %c0_32 = arith.constant 0 : index
      %38 = vector.load %arg12[%c0_31, %c0_32] : memref<16x128xf32, #tpu.memory_space<vmem>>, vector<16x128xf32>
      %39 = arith.truncf %38 : vector<16x128xf32> to vector<16x128xbf16>
      %c0_33 = arith.constant 0 : index
      %c0_34 = arith.constant 0 : index
      %40 = vector.load %arg8[%c0_33, %c0_34] : memref<128x128xbf16, #tpu.memory_space<vmem>>, vector<128x128xbf16>
      %cst_35 = arith.constant dense<0.000000e+00> : vector<16x128xf32>
      %41 = tpu.matmul %39, %40, %cst_35 {dimension_numbers = #tpu.dot_dimension_numbers<[1], [0], [0], [1], [0, 0, 1, 1], [], []>} : vector<16x128xbf16>, vector<128x128xbf16>, vector<16x128xf32> -> vector<16x128xf32>
      %42 = arith.addf %37, %41 : vector<16x128xf32>
      %43 = arith.truncf %42 : vector<16x128xf32> to vector<16x128xbf16>
      %c0_36 = arith.constant 0 : index
      %c0_37 = arith.constant 0 : index
      %44 = vector.load %arg9[%c0_36, %c0_37] : memref<16x128xbf16, #tpu.memory_space<vmem>>, vector<16x128xbf16>
      tpu.vector_store %arg9[%c0_36, %c0_37], %43 {strides = array<i32>} : memref<16x128xbf16, #tpu.memory_space<vmem>>, vector<16x128xbf16>,
    } else {
    }
    return
  }
  func.func @transform_0(%arg0: i32, %arg1: i32) -> (i32, i32) {
    %c0_i32 = arith.constant 0 : i32
    %c0_i32_0 = arith.constant 0 : i32
    return %arg0, %c0_i32 : i32, i32
  }
  func.func @transform_1(%arg0: i32, %arg1: i32) -> (i32, i32) {
    %c0_i32 = arith.constant 0 : i32
    %c0_i32_0 = arith.constant 0 : i32
    return %c0_i32, %arg1 : i32, i32
  }
  func.func @transform_2(%arg0: i32, %arg1: i32) -> (i32, i32) {
    %c0_i32 = arith.constant 0 : i32
    %c0_i32_0 = arith.constant 0 : i32
    return %c0_i32, %arg1 : i32, i32
  }
  func.func @transform_3(%arg0: i32, %arg1: i32) -> (i32, i32) {
    %c0_i32 = arith.constant 0 : i32
    %c0_i32_0 = arith.constant 0 : i32
    %c0_i32_1 = arith.constant 0 : i32
    return %c0_i32, %c0_i32_0 : i32, i32
  }
  func.func @transform_4(%arg0: i32, %arg1: i32) -> (i32, i32) {
    %c0_i32 = arith.constant 0 : i32
    %c0_i32_0 = arith.constant 0 : i32
    return %arg1, %c0_i32 : i32, i32
  }
  func.func @transform_5(%arg0: i32, %arg1: i32) -> (i32, i32) {
    %c0_i32 = arith.constant 0 : i32
    %c0_i32_0 = arith.constant 0 : i32
    return %arg1, %c0_i32 : i32, i32
  }
  func.func @transform_6(%arg0: i32, %arg1: i32) -> (i32, i32) {
    %c0_i32 = arith.constant 0 : i32
    %c0_i32_0 = arith.constant 0 : i32
    %c0_i32_1 = arith.constant 0 : i32
    return %c0_i32, %c0_i32_0 : i32, i32
  }
  func.func @transform_7(%arg0: i32, %arg1: i32) -> (i32, i32) {
    %c0_i32 = arith.constant 0 : i32
    %c0_i32_0 = arith.constant 0 : i32
    return %arg0, %c0_i32 : i32, i32
  }
}

</mosaic_0001>

<bundles_post_ra>
// kernel: tpu_custom_call.1
= control target key start
LH: loop header
LB: loop body
LE: loop exit
PB: predicated region body
PF: predicated region fallthrough
CT: control target
= control target key end

     0   :  { %s2873_s0 = inlined_call_operand.hbm [shape: bf16[32,128], index: 0, kind: input, shape index: {}]   ;;  %s2874_s1 = inlined_call_operand.hbm [shape: bf16[128,512], index: 1, kind: input, shape index: {}]   ;;  %s2875_s2 = inlined_call_operand.hbm [shape: bf16[128,512], index: 2, kind: input, shape index: {}]   ;;  %s2876_s3 = inlined_call_operand.hbm [shape: bf16[128,256], index: 3, kind: input, shape index: {}]   ;;  %s2877_s4 = inlined_call_operand.hbm [shape: bf16[256,128], index: 4, kind: input, shape index: {}]   ;;  %s2878_s5 = inlined_call_operand.hbm [shape: bf16[256,128], index: 5, kind: input, shape index: {}]   ;;  %s2879_s6 = inlined_call_operand.hbm [shape: bf16[128,128], index: 6, kind: input, shape index: {}]   ;;  %s2880_s7 = inlined_call_operand.hbm [shape: bf16[32,128], index: 7, kind: output, shape index: {}]  }
   0x1   :  { %2901 = sst [smem:[#allocation37_spill]] %s2873_s0 }
   0x2   :  { %2902 = sst [smem:[#allocation38_spill]] %s2874_s1 }
   0x3   :  { %2903 = sst [smem:[#allocation39_spill]] %s2875_s2 }
   0x4   :  { %2904 = sst [smem:[#allocation40_spill]] %s2876_s3 }
   0x5   :  { %2905 = sst [smem:[#allocation41_spill]] %s2878_s5 }
   0x6   :  { %2906 = sst [smem:[#allocation42_spill]] %s2879_s6 }
   0x7   :  { %2907 = sst [smem:[#allocation43_spill]] %s2880_s7 }
   0x8   :  { %12 = vsyncpa [#allocation6], 0 }
   0x9   :  { %14 = vsyncpa [#allocation6 + $0x1], 0 }
   0xa   :  { %15 = vsyncpa [#allocation9], 0 }
   0xb   :  { %17 = vsyncpa [#allocation9 + $0x1], 0 }
   0xc   :  { %18 = vsyncpa [#allocation12], 0 }
   0xd   :  { %19 = vsyncpa [#allocation7], 0 }
   0xe   :  { %21 = vsyncpa [#allocation7 + $0x1], 0  ;;  %s2460_s24 = smov 0   ;;  %s2462_s25 = smov 0  }
   0xf   :  { %s2464_s26 = smov 0   ;;  %s2466_s27 = smov 0  }
  0x10   :  { %s2468_s28 = smov 0   ;;  %s2470_s29 = smov 0  }
  0x11   :  { %s2472_s30 = smov 0   ;;  %s2474_s8 = smov 0  }
  0x12   :  { %s2476_s9 = smov 0   ;;  %s2478_s10 = smov 0  }
  0x13   :  { %s2480_s11 = smov 0  }
  0x14 LB: > { %2908 = sst [smem:[#allocation24_spill]] %s2372_s25  ;;  %s36_s12 = sadd.s32 1, %s2400_s9  ;;  %s2408_s11 = sphi %s2480_s11, %s27_s11   ;;  %s2404_s10 = sphi %s2478_s10, %s2962_s10   ;;  %s2400_s9 = sphi %s2476_s9, %s2961_s9   ;;  %s2396_s8 = sphi %s2474_s8, %s2960_s8   ;;  %s2392_s30 = sphi %s2472_s30, %s2959_s30   ;;  %s2388_s29 = sphi %s2470_s29, %s2967_s29   ;;  %s2384_s28 = sphi %s2468_s28, %s2966_s28   ;;  %s2380_s27 = sphi %s2466_s27, %s2965_s27   ;;  %s2376_s26 = sphi %s2464_s26, %s2964_s26   ;;  %s2372_s25 = sphi %s2462_s25, %s2963_s25   ;;  %s2368_s24 = sphi %s2460_s24, %s2956_s24  }
  0x15   : > { %2909 = sst [smem:[#allocation25_spill]] %s2380_s27  ;;  %p54_p0 = scmp.eq.s32.totalorder %s2408_s11, 0 }
  0x16   : > { %2910 = sst [smem:[#allocation26_spill]] %s2392_s30  ;;  %p2517_p1 = scmp.ge.s32.totalorder %s36_s12, 2 }
  0x17   : > { %2911 = sst [smem:[#allocation27_spill]] %s2396_s8  ;;  %s72_s14 = sadd.s32 1, %s2376_s26 }
  0x18   : > { %2912 = sst [smem:[#allocation28_spill]] %s2400_s9  ;;  %p79_p2 = scmp.ne.s32.totalorder %s2376_s26, %s2372_s25 }
  0x19   : > { %2913 = sst [smem:[#allocation29_spill]] %s2404_s10  ;;  %s2969_s12 = smov (%p2517_p1, %s36_s12), 0 }
  0x1a   : > { %2915 = sst [smem:[#allocation30_spill]] %s2969_s12  ;;  %p2530_p3 = por %p79_p2, %p54_p0 }
  0x1b   : > { %s69_s16 = ssub.s32 %s2400_s9, %s2969_s12  ;;  %p2885_p5 = scmp.lt.s32.totalorder %s2408_s11, 4 }
  0x1c   : > { %p70_p4 = scmp.eq.s32.totalorder %s69_s16, 0  ;;  %s2884_s17 = sand.u32 1, %s2408_s11  }
  0x1d   : > { %s2882_s18 = sand.u32 1, %s2376_s26   ;;  %s1811_s21 = sshll.u32 %s2400_s9, 3 }
  0x1e   : > { %s2540_s19 = scalar_select %p70_p4, %s2376_s26, %s72_s14  }
  0x1f   : > { %s1476_s20 = sshll.u32 %s2882_s18, 7  ;;  %s2918_s1 = sld [smem:[#allocation38_spill]] }
  0x20   : > { %2917 = sst [smem:[#allocation31_spill]] %s2540_s19  ;;  %s309_s8 = scalar_lea.vmem [#allocation8], %s1476_s20 }
  0x21   : > { %s317_s30 = sshll.u32 %s309_s8, 4  ;;  %p2552_p6 = pnand %p2885_p5, %p2530_p3  ;;  %s318_s30 = int_to_ptr.vmem [resolvable:$true] %s317_s30 }
  0x22   : > { %s2920_s2 = sld [smem:[#allocation39_spill]]  ;;  %s2561_s8 = scalar_lea.sflag [#allocation9], %s2884_s17 }
  0x23   : > { %s2888_s23 = smov 128   ;;  %s331_s12 = scalar_lea.vmem [#allocation10], %s1476_s20 }
  0x24   : > { %s2569_s19 = sshll.u32 %s331_s12, 4  ;;  %s2575_s18 = sadd.s32 4294967295, %s2408_s11   ;;  %s340_s19 = int_to_ptr.vmem [resolvable:$true] %s2569_s19 }
  0x25   : > { %s314_s7 = scalar_lea.hbm %s2918_s1, %s1811_s21  ;;  %s2889_s1 = smov 8  }
  0x26   : > { %s315_s5 = sshll.u32 %s314_s7, 4  ;;  %s2887_s7 = smov 256   ;;  %s316_s5 = int_to_ptr.hbm [resolvable:$true] %s315_s5 }
  0x27   : > { %1930 = dma.hbm_to_vmem [thread:$0]  (!%p2552_p6), %s316_s5, 2048, %s318_s30, %s2561_s8, %s2887_s7, %s2888_s23, %s2889_s1  }
  0x28   : > { %s336_s22 = scalar_lea.hbm %s2920_s2, %s1811_s21  ;;  %p85_p7 = scmp.ne.s32.totalorder %s2372_s25, %s2368_s24 }
  0x29   : > { %s337_s15 = sshll.u32 %s336_s22, 4  ;;  %p2886_p8 = scmp.eq.s32.totalorder %s2575_s18, 0  ;;  %s2571_s15 = int_to_ptr.hbm [resolvable:$true] %s337_s15 }
  0x2a   : > { %p229_p9 = scmp.eq.s32.totalorder %s2575_s18, 3  ;;  %p1469_p10 = scmp.ge.s32.totalorder %s2408_s11, 1 }
  0x2b   : > { %p242_p11 = scmp.lt.s32.totalorder %s2408_s11, 5  ;;  %p2585_p12 = por %p85_p7, %p2886_p8 }
  0x2c   : > { %s2924_s3 = sld [smem:[#allocation40_spill]]  ;;  %s2413_s21 = smov [#allocation11]  }
  0x2d   : > { %s2921_s5 = scalar_select %p2585_p12, 1, 0 }
  0x2e   : > { %p2589_p13 = pnand %p1469_p10, %p242_p11  ;;  %s255_s16 = sshll.u32 %s2413_s21, 4  ;;  %s256_s16 = int_to_ptr.vmem [resolvable:$true] %s255_s16 }
  0x2f   : > { %2922 = sst [smem:[#allocation32_spill]] %s2921_s5  ;;  %s1468_s24 = sadd.s32 4294967294, %s2408_s11  }
  0x30   : > { %p1917_p2 = pneg %p2589_p13  ;;  %s39_s12 = sadd.s32 1, %s2404_s10 }
  0x31   : > { %s46_s17 = sadd.s32 1, %s2388_s29  ;;  %s2971_s12 = smov (!%p2517_p1, %s39_s12), %s2404_s10 }
  0x32   : > { %s253_s20 = sshll.u32 %s2924_s3, 4  ;;  %p2600_p3 = pnand %p1917_p2, %p2886_p8  ;;  %s254_s20 = int_to_ptr.hbm [resolvable:$true] %s253_s20 }
  0x33   : > { %p53_p4 = scmp.ne.s32.totalorder %s2388_s29, %s2384_s28  ;;  %p59_p7 = scmp.ne.s32.totalorder %s2384_s28, %s2380_s27 }
  0x34   : > { %1920 = dma.hbm_to_vmem [thread:$0]  (!%p2600_p3), %s254_s20, 2048, %s256_s16, [#allocation12], %s2888_s23, %s2888_s23, %s2889_s1  }
  0x35   : > { %p41_p10 = scmp.ge.s32.totalorder %s2971_s12, 2  ;;  %p235_p11 = scmp.eq.s32.totalorder %s1468_s24, 3 }
  0x36   : > { %p2621_p2 = por %p54_p0, %p53_p4  ;;  %p2627_p5 = por %p2886_p8, %p59_p7 }
  0x37   : > { %s2973_s12 = smov (%p41_p10, %s2971_s12), 0  ;;  %p2635_p1 = por %p229_p9, %p53_p4 }
  0x38   : > { %s2927_s20 = scalar_select %p2627_p5, 1, 0 }
  0x39   : > { %2929 = sst [smem:[#allocation34_spill]] %s2973_s12  ;;  %p2639_p0 = por %p235_p11, %p59_p7 }
  0x3a   : > { %2928 = sst [smem:[#allocation33_spill]] %s2927_s20  ;;  %s43_s24 = ssub.s32 %s2404_s10, %s2973_s12 }
  0x3b   : > { %s2930_s13 = scalar_select %p2635_p1, 1, 0 }
  0x3c   : > { %p44_p8 = scmp.eq.s32.totalorder %s43_s24, 0  ;;  %s285_s7 = sand.u32 1, %s2388_s29  }
  0x3d   : > { %2931 = sst [smem:[#allocation35_spill]] %s2930_s13  ;;  %s1473_s1 = sshll.u32 %s285_s7, 3 }
  0x3e   : > { %s2647_s23 = scalar_select %p44_p8, %s2388_s29, %s46_s17  }
  0x3f   : > { %s1810_s2 = sshll.u32 %s2404_s10, 3  ;;  %s2934_s0 = sld [smem:[#allocation37_spill]] }
  0x40   : > { %2933 = sst [smem:[#allocation36_spill]] %s2647_s23  ;;  %s287_s25 = scalar_lea.vmem [#allocation5], %s1473_s1 }
  0x41   : > { %s295_s20 = sshll.u32 %s287_s25, 4  ;;  %p2935_p9 = scmp.lt.s32.totalorder %s2408_s11, 4  ;;  %s296_s20 = int_to_ptr.vmem [resolvable:$true] %s295_s20 }
  0x42   : > { %s2936_s6 = sld [smem:[#allocation42_spill]]  ;;  %s2937_s12 = smov 8  }
  0x43   : > { %p1925_p4 = pnand %p2935_p9, %p2621_p2  ;;  %s2938_s10 = smov 128  }
  0x44   : > { %s2939_s23 = smov 256   ;;  %s2940_s1 = sand.u32 1, %s2408_s11  }
  0x45   : > { %s292_s13 = scalar_lea.hbm %s2934_s0, %s1810_s2  ;;  %s284_s2 = scalar_lea.sflag [#allocation6], %s2940_s1 }
  0x46   : > { %s293_s5 = sshll.u32 %s292_s13, 4  ;;  %s2414_s3 = smov 64   ;;  %s294_s5 = int_to_ptr.hbm [resolvable:$true] %s293_s5 }
  0x47   : > { %1933 = dma.hbm_to_vmem [thread:$0]  (!%p2552_p6), %s2571_s15, 2048, %s340_s19, %s2561_s8, %s2939_s23, %s2938_s10, %s2937_s12  }
  0x48   : > { %s267_s7 = sshll.u32 %s2936_s6, 4  ;;  %s2415_s25 = smov 4   ;;  %s268_s7 = int_to_ptr.hbm [resolvable:$true] %s267_s7 }
  0x49   : > { %1927 = dma.hbm_to_vmem [thread:$0]  (!%p1925_p4), %s294_s5, 128, %s296_s20, %s284_s2, %s2414_s3, %s2414_s3, %s2415_s25  }
  0x4a   : > { %s2941_s27 = sand.u32 1, %s2376_s26   ;;  %s2416_s13 = smov [#allocation15]  }
  0x4b   : > { %s1482_s21 = sshll.u32 %s2941_s27, 6  ;;  %s269_s0 = sshll.u32 %s2416_s13, 4  ;;  %s270_s0 = int_to_ptr.vmem [resolvable:$true] %s269_s0 }
  0x4c   : > { %s1813_s24 = sshll.u32 %s2400_s9, 6  ;;  %s353_s19 = scalar_lea.vmem [#allocation13], %s1482_s21 }
  0x4d   : > { %1923 = dma.hbm_to_vmem [thread:$0]  (!%p2600_p3), %s268_s7, 1024, %s270_s0, [#allocation12], %s2414_s3, %s2414_s3, %s2415_s25  }
  0x4e   : > { %s358_s10 = scalar_lea.hbm %s2877_s4, %s1813_s24  ;;  %s361_s23 = sshll.u32 %s353_s19, 4  ;;  %s362_s23 = int_to_ptr.vmem [resolvable:$true] %s361_s23 }
  0x4f   : > { %s359_s15 = sshll.u32 %s358_s10, 4  ;;  %s2942_s20 = sld [smem:[#allocation41_spill]]  ;;  %s360_s15 = int_to_ptr.hbm [resolvable:$true] %s359_s15 }
  0x50   : > { %1936 = dma.hbm_to_vmem [thread:$0]  (!%p2552_p6), %s360_s15, 1024, %s362_s23, %s284_s2, %s2414_s3, %s2414_s3, %s2415_s25  }
  0x51   : > { %s375_s27 = scalar_lea.vmem [#allocation14], %s1482_s21  ;;  %s397_s6 = sand.u32 (!%p2589_p13), 1, %s2575_s18  }
  0x52   : > { %s383_s13 = sshll.u32 %s375_s27, 4  ;;  %s399_s22 = sand.u32 (!%p2589_p13), 1, %s2384_s28   ;;  %s384_s13 = int_to_ptr.vmem [resolvable:$true] %s383_s13 }
  0x53   : > { %395 = sbr.rel (%p2589_p13) target bundleno = 837 (0x345), region = 48  ;;  %s2693_s7 = sshll.u32 (!%p2589_p13), %s399_s22, 3 }
  0x54   : > { %s398_s2 = scalar_lea.sflag (!%p2589_p13), [#allocation6], %s397_s6  ;;  %s401_s21 = scalar_lea.vmem (!%p2589_p13), [#allocation5], %s2693_s7 }
  0x55   : > { %s380_s1 = scalar_lea.hbm %s2942_s20, %s1813_s24 }
  0x56   : > { %s381_s9 = sshll.u32 %s380_s1, 4  ;;  %s382_s9 = int_to_ptr.hbm [resolvable:$true] %s381_s9 }
  0x57   : > { %1939 = dma.hbm_to_vmem [thread:$0]  (!%p2552_p6), %s382_s9, 1024, %s384_s13, %s2561_s8, %s2414_s3, %s2414_s3, %s2415_s25  }
  0x58   : > { %2339 = dma.done.wait (%p2627_p5), %s398_s2, 128  }
  0x59   : > { %2341 = vsyncadd (%p2627_p5), %s398_s2, 4294967168  ;;  %s2944_s9 = sld [smem:[#allocation24_spill]]  ;;  %s408_s3 = scalar_lea.sflag [#allocation9], %s397_s6 }
  0x5f   : > { %s409_s8 = sand.u32 1, %s2944_s9  }
  0x60   : > { %s1490_s30 = sshll.u32 %s409_s8, 7 }
  0x61   : > { %s2701_s25 = scalar_lea.vmem [#allocation8], %s1490_s30 }
  0x62   : > { %2343 = dma.done.wait (%p2585_p12), %s408_s3, 4096  }
  0x63   : > { %2345 = vsyncadd (%p2585_p12), %s408_s3, 4294963200  ;;  %s2707_s24 = scalar_lea.vmem [#allocation10], %s1490_s30  ;;  %p2946_p6 = scmp.eq.s32.totalorder %s2575_s18, 0 }
  0x65   : > { %2347 = dma.done.wait (%p2946_p6), [#allocation12], 2048   ;;  %p2947_p8 = pmov %p2946_p6 }
  0x66   : > { %s1493_s17 = sshll.u32 %s409_s8, 6 }
  0x67   : > { %2349 = vsyncadd (%p2947_p8), [#allocation12], 4294965248  ;;  %s2713_s10 = scalar_lea.vmem [#allocation13], %s1493_s17 }
  0x68   : > { %2351 = dma.done.wait (%p2585_p12), %s398_s2, 1024  }
  0x69   : > { %2353 = vsyncadd (%p2585_p12), %s398_s2, 4294966272  ;;  %s2719_s19 = scalar_lea.vmem [#allocation14], %s1493_s17 }
  0x6a   : > { %2355 = dma.done.wait (%p2585_p12), %s408_s3, 1024  }
  0x6b   : > { %2357 = vsyncadd (%p2585_p12), %s408_s3, 4294966272  ;;  %p2948_p5 = pmov %p2946_p6 }
  0x6d   : > { %2359 = dma.done.wait (%p2948_p5), [#allocation12], 1024   ;;  %p2949_p13 = pmov %p2948_p5 }
  0x6e   : > { %s502_s23 = scalar_lea.vmem [#allocation16], %s2693_s7  ;;  %s2950_s15 = sld [smem:[#allocation26_spill]] }
  0x6f   : > { %2361 = vsyncadd (%p2949_p13), [#allocation12], 4294966272 }
  0x74   : > { %p1497_p3 = scmp.ne.s32.totalorder %s2950_s15, 0 }
  0x76   : > { %512 = sbr.rel (%p1497_p3) target bundleno = 295 (0x127), region = 80 }
  0x7b   : > { %v1560_v0 = vld [vmem:[#allocation11 + $0x70] sm:$0xf]  ;;  %v1831_v1 = vld [vmem:[#allocation11 + $0x74] sm:$0xf0]  ;;  %v1830_v2 = vld [vmem:[#allocation11 + $0x74] sm:$0xf] }
  0x7c   : > { %v1561_v3 = vor.u32 %v1831_v1, %v1560_v0  ;;  %v1562_v4 = vld [vmem:[#allocation11 + $0x78] sm:$0xf0]  ;;  %v1552_v5 = vld [vmem:[#allocation11 + $0x60] sm:$0xf]  ;;  %v1829_v6 = vld [vmem:[#allocation11 + $0x64] sm:$0xf0] }
  0x7d   : > { %v1565_v7 = vor.u32 %v1830_v2, %v1562_v4  ;;  %v1828_v8 = vld [vmem:[#allocation11 + $0x64] sm:$0xf]  ;;  %v1554_v9 = vld [vmem:[#allocation11 + $0x68] sm:$0xf0]  ;;  %v1553_v10 = vor.u32 %v1829_v6, %v1552_v5  ;;  %v1544_v12 = vld [vmem:[#allocation11 + $0x50] sm:$0xf] }
  0x7e   : > { %617 = vmatpush.bf16.msra.mxu0 %v1561_v3  ;;  %v1557_v11 = vor.u32 %v1828_v8, %v1554_v9  ;;  %v1827_v13 = vld [vmem:[#allocation11 + $0x54] sm:$0xf0]  ;;  %v1826_v14 = vld [vmem:[#allocation11 + $0x54] sm:$0xf]  ;;  %v1546_v15 = vld [vmem:[#allocation11 + $0x58] sm:$0xf0] }
  0x7f   : > { %631 = vmatpush.bf16.msra.mxu1 %v1565_v7  ;;  %v1545_v16 = vor.u32 %v1827_v13, %v1544_v12  ;;  %v1549_v17 = vor.u32 %v1826_v14, %v1546_v15  ;;  %v1536_v18 = vld [vmem:[#allocation11 + $0x40] sm:$0xf]  ;;  %v1825_v19 = vld [vmem:[#allocation11 + $0x44] sm:$0xf0]  ;;  %v1824_v20 = vld [vmem:[#allocation11 + $0x44] sm:$0xf] }
  0x80   : > { %v1538_v21 = vld [vmem:[#allocation11 + $0x48] sm:$0xf0]  ;;  %v1537_v22 = vor.u32 %v1825_v19, %v1536_v18  ;;  %v1528_v24 = vld [vmem:[#allocation11 + $0x30] sm:$0xf]  ;;  %v1823_v25 = vld [vmem:[#allocation11 + $0x34] sm:$0xf0] }
  0x81   : > { %v1541_v23 = vor.u32 %v1824_v20, %v1538_v21  ;;  %v1822_v26 = vld [vmem:[#allocation11 + $0x34] sm:$0xf]  ;;  %v1530_v27 = vld [vmem:[#allocation11 + $0x38] sm:$0xf0]  ;;  %v1529_v28 = vor.u32 %v1823_v25, %v1528_v24  ;;  %v1520_v30 = vld [vmem:[#allocation11 + $0x20] sm:$0xf] }
  0x82   : > { %618 = vmatpush.bf16.msra.mxu0 %v1553_v10  ;;  %v1533_v29 = vor.u32 %v1822_v26, %v1530_v27  ;;  %v1821_v31 = vld [vmem:[#allocation11 + $0x24] sm:$0xf0]  ;;  %v1820_v32 = vld [vmem:[#allocation11 + $0x24] sm:$0xf]  ;;  %v1522_v33 = vld [vmem:[#allocation11 + $0x28] sm:$0xf0] }
  0x83   : > { %632 = vmatpush.bf16.msra.mxu1 %v1557_v11  ;;  %v1521_v34 = vor.u32 %v1821_v31, %v1520_v30  ;;  %v1525_v35 = vor.u32 %v1820_v32, %v1522_v33  ;;  %v1512_v36 = vld [vmem:[#allocation11 + $0x10] sm:$0xf]  ;;  %v1819_v37 = vld [vmem:[#allocation11 + $0x14] sm:$0xf0]  ;;  %v1818_v38 = vld [vmem:[#allocation11 + $0x14] sm:$0xf] }
  0x84   : > { %v1514_v39 = vld [vmem:[#allocation11 + $0x18] sm:$0xf0]  ;;  %v1513_v40 = vor.u32 %v1819_v37, %v1512_v36  ;;  %v1504_v42 = vld [vmem:[#allocation11] sm:$0xf]  ;;  %v1817_v43 = vld [vmem:[#allocation11 + $0x4] sm:$0xf0] }
  0x85   : > { %v1517_v41 = vor.u32 %v1818_v38, %v1514_v39  ;;  %v1816_v44 = vld [vmem:[#allocation11 + $0x4] sm:$0xf]  ;;  %v1506_v45 = vld [vmem:[#allocation11 + $0x8] sm:$0xf0]  ;;  %v1505_v46 = vor.u32 %v1817_v43, %v1504_v42  ;;  %v1815_v48 = vld [vmem:[%s401_s21] sm:$0xff]  ;;  %v2417_v49 = vmov 0.0  }
  0x86   : > { %619 = vmatpush.bf16.msra.mxu0 %v1545_v16  ;;  %v1509_v47 = vor.u32 %v1816_v44, %v1506_v45  ;;  %649 = vst [vmem:[#allocation3] sm:$0xff] %v2417_v49 }
  0x87   : > { %633 = vmatpush.bf16.msra.mxu1 %v1549_v17  ;;  %650 = vst [vmem:[#allocation3 + $0x8] sm:$0xff] %v2417_v49 }
  0x88   : > { %651 = vst [vmem:[#allocation4 + $0x8] sm:$0xff] %v2417_v49 }
  0x89   : > { %652 = vst [vmem:[#allocation4] sm:$0xff] %v2417_v49 }
  0x8a   : > { %620 = vmatpush.bf16.msra.mxu0 %v1537_v22 }
  0x8b   : > { %634 = vmatpush.bf16.msra.mxu1 %v1541_v23 }
  0x8e   : > { %621 = vmatpush.bf16.msra.mxu0 %v1529_v28 }
  0x8f   : > { %635 = vmatpush.bf16.msra.mxu1 %v1533_v29 }
  0x92   : > { %622 = vmatpush.bf16.msra.mxu0 %v1521_v34 }
  0x93   : > { %636 = vmatpush.bf16.msra.mxu1 %v1525_v35 }
  0x96   : > { %623 = vmatpush.bf16.msra.mxu0 %v1513_v40 }
  0x97   : > { %637 = vmatpush.bf16.msra.mxu1 %v1517_v41 }
  0x9a   : > { %624 = vmatpush.bf16.msra.mxu0 %v1505_v46 }
  0x9b   : > { %638 = vmatpush.bf16.msra.mxu1 %v1509_v47 }
  0x9d   : > { %625 = vmatmul.bf16.vlgmr.msra.gmra.mxu0 %v1815_v48 }
  0x9e   : > { %639 = vmatmul.bf16.vlgmr.msra.gmra.mxu1 %v1815_v48 }
 0x11a   : > { %v626_v50 = vpop.f32.mrf.mxu0 }
 0x11b   : > { %v640_v51 = vpop.f32.mrf.mxu1 }
 0x11c   : > { %v645_v52 = vpack.c.bf16 %v640_v51, %v626_v50 }
 0x11e   : > { %647 = vst [vmem:[#allocation2] sm:$0xff] %v645_v52 }
 0x122   : > { %v628_v53 = vpop.f32.mrf.mxu0 }
 0x123   : > { %v642_v54 = vpop.f32.mrf.mxu1 }
 0x124   : > { %v646_v55 = vpack.c.bf16 %v642_v54, %v628_v53 }
 0x126   : > { %648 = vst [vmem:[#allocation2 + $0x8] sm:$0xff] %v646_v55 }
 0x127 PF: > { %v1628_v56 = vld [vmem:[%s2701_s25 + $0x70] sm:$0xf]  ;;  %v1850_v57 = vld [vmem:[%s2701_s25 + $0x74] sm:$0xf0]  ;;  %v1620_v61 = vld [vmem:[%s2701_s25 + $0x60] sm:$0xf] }
 0x128   : > { %v1668_v58 = vld [vmem:[%s2707_s24 + $0x70] sm:$0xf]  ;;  %v1629_v59 = vor.u32 %v1850_v57, %v1628_v56  ;;  %v1858_v60 = vld [vmem:[%s2707_s24 + $0x74] sm:$0xf0]  ;;  %v1848_v62 = vld [vmem:[%s2701_s25 + $0x64] sm:$0xf0] }
 0x129   : > { %v1669_v63 = vor.u32 %v1858_v60, %v1668_v58  ;;  %v1664_v0 = vld [vmem:[%s2707_s24 + $0x60] sm:$0xf]  ;;  %v1857_v1 = vld [vmem:[%s2707_s24 + $0x64] sm:$0xf0]  ;;  %v1621_v2 = vor.u32 %v1848_v62, %v1620_v61  ;;  %v1612_v4 = vld [vmem:[%s2701_s25 + $0x50] sm:$0xf] }
 0x12a   : > { %761 = vmatpush.bf16.msra.mxu0 %v1629_v59  ;;  %v1665_v3 = vor.u32 %v1857_v1, %v1664_v0  ;;  %v1846_v5 = vld [vmem:[%s2701_s25 + $0x54] sm:$0xf0]  ;;  %v1660_v6 = vld [vmem:[%s2707_s24 + $0x50] sm:$0xf]  ;;  %v1604_v9 = vld [vmem:[%s2701_s25 + $0x40] sm:$0xf] }
 0x12b   : > { %859 = vmatpush.bf16.msra.mxu2 %v1669_v63  ;;  %v1856_v7 = vld [vmem:[%s2707_s24 + $0x54] sm:$0xf0]  ;;  %v1613_v8 = vor.u32 %v1846_v5, %v1612_v4  ;;  %v1844_v11 = vld [vmem:[%s2701_s25 + $0x44] sm:$0xf0]  ;;  %v1704_v12 = vld [vmem:[%s2707_s24 + $0x74] sm:$0xf] }
 0x12c   : > { %v1661_v10 = vor.u32 %v1856_v7, %v1660_v6  ;;  %v1866_v13 = vld [vmem:[%s2707_s24 + $0x78] sm:$0xf0]  ;;  %v1656_v14 = vld [vmem:[%s2707_s24 + $0x40] sm:$0xf]  ;;  %v1855_v15 = vld [vmem:[%s2707_s24 + $0x44] sm:$0xf0]  ;;  %v1605_v19 = vor.u32 %v1844_v11, %v1604_v9 }
 0x12d   : > { %v1705_v16 = vor.u32 %v1866_v13, %v1704_v12  ;;  %v1700_v17 = vld [vmem:[%s2707_s24 + $0x64] sm:$0xf]  ;;  %v1865_v18 = vld [vmem:[%s2707_s24 + $0x68] sm:$0xf0]  ;;  %v1849_v21 = vld [vmem:[%s2701_s25 + $0x74] sm:$0xf]  ;;  %v1657_v23 = vor.u32 %v1855_v15, %v1656_v14 }
 0x12e   : > { %762 = vmatpush.bf16.msra.mxu0 %v1621_v2  ;;  %v1701_v20 = vor.u32 %v1865_v18, %v1700_v17  ;;  %v1630_v22 = vld [vmem:[%s2701_s25 + $0x78] sm:$0xf0]  ;;  %v1596_v24 = vld [vmem:[%s2701_s25 + $0x30] sm:$0xf]  ;;  %v1842_v25 = vld [vmem:[%s2701_s25 + $0x34] sm:$0xf0] }
 0x12f   : > { %860 = vmatpush.bf16.msra.mxu2 %v1665_v3  ;;  %945 = vmatpush.bf16.msra.mxu3 %v1705_v16  ;;  %v1633_v26 = vor.u32 %v1849_v21, %v1630_v22  ;;  %v1696_v27 = vld [vmem:[%s2707_s24 + $0x54] sm:$0xf]  ;;  %v1652_v28 = vld [vmem:[%s2707_s24 + $0x30] sm:$0xf]  ;;  %v1854_v29 = vld [vmem:[%s2707_s24 + $0x34] sm:$0xf0]  ;;  %v1597_v33 = vor.u32 %v1842_v25, %v1596_v24 }
 0x130   : > { %v1864_v30 = vld [vmem:[%s2707_s24 + $0x58] sm:$0xf0]  ;;  %v1847_v31 = vld [vmem:[%s2701_s25 + $0x64] sm:$0xf]  ;;  %v1622_v32 = vld [vmem:[%s2701_s25 + $0x68] sm:$0xf0]  ;;  %v1653_v39 = vor.u32 %v1854_v29, %v1652_v28 }
 0x131   : > { %775 = vmatpush.bf16.msra.mxu1 %v1633_v26  ;;  %v1588_v34 = vld [vmem:[%s2701_s25 + $0x20] sm:$0xf]  ;;  %v1840_v35 = vld [vmem:[%s2701_s25 + $0x24] sm:$0xf0]  ;;  %v1697_v36 = vor.u32 %v1864_v30, %v1696_v27  ;;  %v1625_v37 = vor.u32 %v1847_v31, %v1622_v32  ;;  %v1845_v38 = vld [vmem:[%s2701_s25 + $0x54] sm:$0xf] }
 0x132   : > { %763 = vmatpush.bf16.msra.mxu0 %v1613_v8  ;;  %v1692_v40 = vld [vmem:[%s2707_s24 + $0x44] sm:$0xf]  ;;  %v1863_v41 = vld [vmem:[%s2707_s24 + $0x48] sm:$0xf0]  ;;  %v1614_v42 = vld [vmem:[%s2701_s25 + $0x58] sm:$0xf0]  ;;  %v1589_v46 = vor.u32 %v1840_v35, %v1588_v34 }
 0x133   : > { %861 = vmatpush.bf16.msra.mxu2 %v1661_v10  ;;  %946 = vmatpush.bf16.msra.mxu3 %v1701_v20  ;;  %v1648_v43 = vld [vmem:[%s2707_s24 + $0x20] sm:$0xf]  ;;  %v1853_v44 = vld [vmem:[%s2707_s24 + $0x24] sm:$0xf0]  ;;  %v1617_v45 = vor.u32 %v1845_v38, %v1614_v42  ;;  %v1580_v47 = vld [vmem:[%s2701_s25 + $0x10] sm:$0xf]  ;;  %v1693_v48 = vor.u32 %v1863_v41, %v1692_v40 }
 0x134   : > { %v1843_v49 = vld [vmem:[%s2701_s25 + $0x44] sm:$0xf]  ;;  %v1606_v50 = vld [vmem:[%s2701_s25 + $0x48] sm:$0xf0]  ;;  %v1649_v51 = vor.u32 %v1853_v44, %v1648_v43  ;;  %v1838_v52 = vld [vmem:[%s2701_s25 + $0x14] sm:$0xf0] }
 0x135   : > { %776 = vmatpush.bf16.msra.mxu1 %v1625_v37  ;;  %v1688_v53 = vld [vmem:[%s2707_s24 + $0x34] sm:$0xf]  ;;  %v1862_v54 = vld [vmem:[%s2707_s24 + $0x38] sm:$0xf0]  ;;  %v1644_v55 = vld [vmem:[%s2707_s24 + $0x10] sm:$0xf]  ;;  %v1609_v57 = vor.u32 %v1843_v49, %v1606_v50  ;;  %v1581_v58 = vor.u32 %v1838_v52, %v1580_v47 }
 0x136   : > { %764 = vmatpush.bf16.msra.mxu0 %v1605_v19  ;;  %v1852_v56 = vld [vmem:[%s2707_s24 + $0x14] sm:$0xf0]  ;;  %v1572_v59 = vld [vmem:[%s2701_s25] sm:$0xf]  ;;  %v1689_v60 = vor.u32 %v1862_v54, %v1688_v53  ;;  %v1841_v61 = vld [vmem:[%s2701_s25 + $0x34] sm:$0xf] }
 0x137   : > { %862 = vmatpush.bf16.msra.mxu2 %v1657_v23  ;;  %947 = vmatpush.bf16.msra.mxu3 %v1697_v36  ;;  %v1598_v62 = vld [vmem:[%s2701_s25 + $0x38] sm:$0xf0]  ;;  %v1645_v63 = vor.u32 %v1852_v56, %v1644_v55  ;;  %v1836_v0 = vld [vmem:[%s2701_s25 + $0x4] sm:$0xf0]  ;;  %v1684_v1 = vld [vmem:[%s2707_s24 + $0x24] sm:$0xf] }
 0x138   : > { %v1861_v2 = vld [vmem:[%s2707_s24 + $0x28] sm:$0xf0]  ;;  %v1640_v3 = vld [vmem:[%s2707_s24] sm:$0xf]  ;;  %v1851_v4 = vld [vmem:[%s2707_s24 + $0x4] sm:$0xf0]  ;;  %v1601_v5 = vor.u32 %v1841_v61, %v1598_v62  ;;  %v1573_v6 = vor.u32 %v1836_v0, %v1572_v59 }
 0x139   : > { %777 = vmatpush.bf16.msra.mxu1 %v1617_v45  ;;  %v1636_v7 = vld [vmem:[#allocation2] sm:$0xf]  ;;  %v1685_v8 = vor.u32 %v1861_v2, %v1684_v1  ;;  %v1839_v9 = vld [vmem:[%s2701_s25 + $0x24] sm:$0xf]  ;;  %v1590_v10 = vld [vmem:[%s2701_s25 + $0x28] sm:$0xf0]  ;;  %v1641_v11 = vor.u32 %v1851_v4, %v1640_v3 }
 0x13a   : > { %765 = vmatpush.bf16.msra.mxu0 %v1597_v33  ;;  %v1833_v12 = vld [vmem:[#allocation2 + $0x4] sm:$0xf0]  ;;  %v1680_v13 = vld [vmem:[%s2707_s24 + $0x14] sm:$0xf]  ;;  %v1860_v14 = vld [vmem:[%s2707_s24 + $0x18] sm:$0xf0]  ;;  %v1593_v16 = vor.u32 %v1839_v9, %v1590_v10 }
 0x13b   : > { %863 = vmatpush.bf16.msra.mxu2 %v1653_v39  ;;  %948 = vmatpush.bf16.msra.mxu3 %v1693_v48  ;;  %v1832_v15 = vld [vmem:[%s401_s21] sm:$0xff]  ;;  %v1637_v17 = vor.u32 %v1833_v12, %v1636_v7  ;;  %v1681_v18 = vor.u32 %v1860_v14, %v1680_v13  ;;  %v1676_v21 = vld [vmem:[%s2707_s24 + $0x4] sm:$0xf]  ;;  %v1859_v22 = vld [vmem:[%s2707_s24 + $0x8] sm:$0xf0]  ;;  %s2951_s18 = sld [smem:[#allocation26_spill]] }
 0x13c   : > { %v1837_v19 = vld [vmem:[%s2701_s25 + $0x14] sm:$0xf]  ;;  %v1582_v20 = vld [vmem:[%s2701_s25 + $0x18] sm:$0xf0]  ;;  %v1672_v24 = vld [vmem:[#allocation2 + $0x4] sm:$0xf]  ;;  %v1677_v25 = vor.u32 %v1859_v22, %v1676_v21 }
 0x13d   : > { %778 = vmatpush.bf16.msra.mxu1 %v1609_v57  ;;  %v1585_v23 = vor.u32 %v1837_v19, %v1582_v20  ;;  %v1834_v26 = vld [vmem:[#allocation2 + $0x8] sm:$0xf0]  ;;  %v1835_v27 = vld [vmem:[%s2701_s25 + $0x4] sm:$0xf]  ;;  %v1874_v31 = vld [vmem:[%s2713_s10 + $0x38] sm:$0xff] }
 0x13e   : > { %766 = vmatpush.bf16.msra.mxu0 %v1589_v46  ;;  %v1574_v28 = vld [vmem:[%s2701_s25 + $0x8] sm:$0xf0]  ;;  %v1673_v29 = vor.u32 %v1834_v26, %v1672_v24  ;;  %v1882_v32 = vld [vmem:[%s2719_s19 + $0x38] sm:$0xff]  ;;  %v1873_v33 = vld [vmem:[%s2713_s10 + $0x30] sm:$0xff] }
 0x13f   : > { %864 = vmatpush.bf16.msra.mxu2 %v1649_v51  ;;  %949 = vmatpush.bf16.msra.mxu3 %v1689_v60  ;;  %v1577_v30 = vor.u32 %v1835_v27, %v1574_v28  ;;  %v1881_v34 = vld [vmem:[%s2719_s19 + $0x30] sm:$0xff]  ;;  %v1872_v35 = vld [vmem:[%s2713_s10 + $0x28] sm:$0xff]  ;;  %v1871_v37 = vld [vmem:[%s2713_s10 + $0x20] sm:$0xff] }
 0x140   : > { %v1880_v36 = vld [vmem:[%s2719_s19 + $0x28] sm:$0xff]  ;;  %v1879_v38 = vld [vmem:[%s2719_s19 + $0x20] sm:$0xff]  ;;  %v1870_v39 = vld [vmem:[%s2713_s10 + $0x18] sm:$0xff] }
 0x141   : > { %779 = vmatpush.bf16.msra.mxu1 %v1601_v5  ;;  %v1878_v40 = vld [vmem:[%s2719_s19 + $0x18] sm:$0xff]  ;;  %v1869_v43 = vld [vmem:[%s2713_s10 + $0x10] sm:$0xff]  ;;  %v1868_v47 = vld [vmem:[%s2713_s10 + $0x8] sm:$0xff]  ;;  %p1772_p12 = scmp.ne.s32.totalorder %s2951_s18, 1 }
 0x142   : > { %767 = vmatpush.bf16.msra.mxu0 %v1581_v58  ;;  %v1877_v44 = vld [vmem:[%s2719_s19 + $0x10] sm:$0xff]  ;;  %v1876_v48 = vld [vmem:[%s2719_s19 + $0x8] sm:$0xff]  ;;  %v1867_v51 = vld [vmem:[%s2713_s10] sm:$0xff] }
 0x143   : > { %865 = vmatpush.bf16.msra.mxu2 %v1645_v63  ;;  %950 = vmatpush.bf16.msra.mxu3 %v1685_v8  ;;  %v1875_v52 = vld [vmem:[%s2719_s19] sm:$0xff]  ;;  %v1004_v26 = vld [vmem:[#allocation3] sm:$0xff]  ;;  %v1088_v27 = vld [vmem:[#allocation4 + $0x8] sm:$0xff] }
 0x145   : > { %780 = vmatpush.bf16.msra.mxu1 %v1593_v16 }
 0x146   : > { %768 = vmatpush.bf16.msra.mxu0 %v1573_v6 }
 0x147   : > { %866 = vmatpush.bf16.msra.mxu2 %v1641_v11  ;;  %951 = vmatpush.bf16.msra.mxu3 %v1681_v18 }
 0x149   : > { %769 = vmatmul.bf16.vlgmr.msra.gmra.mxu0 %v1832_v15  ;;  %781 = vmatpush.bf16.msra.mxu1 %v1585_v23 }
 0x14a   : > { %867 = vmatmul.bf16.vlgmr.msra.gmra.mxu2 %v1637_v17  ;;  %1070 = vmatpush.bf16.msrb.mxu0 %v1874_v31 }
 0x14b   : > { %952 = vmatpush.bf16.msra.mxu3 %v1677_v25 }
 0x14d   : > { %782 = vmatpush.bf16.msra.mxu1 %v1577_v30 }
 0x14e   : > { %953 = vmatmul.bf16.vlgmr.msra.gmra.mxu3 %v1673_v29  ;;  %1071 = vmatpush.bf16.msrb.mxu0 %v1873_v33  ;;  %v1089_v33 = vld [vmem:[#allocation4] sm:$0xff] }
 0x150   : > { %783 = vmatmul.bf16.vlgmr.msra.gmra.mxu1 %v1832_v15 }
 0x151   : > { %1154 = vmatpush.bf16.msrb.mxu1 %v1882_v32  ;;  %v1005_v32 = vld [vmem:[#allocation3 + $0x8] sm:$0xff] }
 0x152   : > { %1072 = vmatpush.bf16.msrb.mxu0 %v1872_v35 }
 0x155   : > { %1155 = vmatpush.bf16.msrb.mxu1 %v1881_v34 }
 0x156   : > { %1073 = vmatpush.bf16.msrb.mxu0 %v1871_v37 }
 0x159   : > { %1156 = vmatpush.bf16.msrb.mxu1 %v1880_v36 }
 0x15a   : > { %1074 = vmatpush.bf16.msrb.mxu0 %v1870_v39 }
 0x15d   : > { %1157 = vmatpush.bf16.msrb.mxu1 %v1879_v38 }
 0x15e   : > { %1075 = vmatpush.bf16.msrb.mxu0 %v1869_v43 }
 0x161   : > { %1158 = vmatpush.bf16.msrb.mxu1 %v1878_v40 }
 0x162   : > { %1076 = vmatpush.bf16.msrb.mxu0 %v1868_v47 }
 0x165   : > { %1159 = vmatpush.bf16.msrb.mxu1 %v1877_v44 }
 0x166   : > { %1077 = vmatpush.bf16.msrb.mxu0 %v1867_v51 }
 0x169   : > { %1160 = vmatpush.bf16.msrb.mxu1 %v1876_v48 }
 0x16d   : > { %1161 = vmatpush.bf16.msrb.mxu1 %v1875_v52 }
 0x1c6   : > { %v770_v41 = vpop.f32.mrf.mxu0 }
 0x1cd   : > { %v868_v42 = vpop.f32.mrf.mxu2  ;;  %v784_v63 = vpop.f32.mrf.mxu1 }
 0x1ce   : > { %v873_v45 = vadd.f32 %v868_v42, %v770_v41  ;;  %v772_v49 = vpop.f32.mrf.mxu0 }
 0x1d0   : > { %v1706_v46 = vmul.f32 -1.442695, %v873_v45 }
 0x1d1   : > { %v954_v0 = vpop.f32.mrf.mxu3 }
 0x1d2   : > { %2048 = vpow2.f32 %v1706_v46  ;;  %v959_v19 = vadd.f32 %v954_v0, %v784_v63 }
 0x1d5   : > { %v870_v50 = vpop.f32.mrf.mxu2  ;;  %v786_v15 = vpop.f32.mrf.mxu1 }
 0x1d6   : > { %v874_v53 = vadd.f32 %v870_v50, %v772_v49 }
 0x1d8   : > { %v2049_v54 = vpop.eup %2048  ;;  %v1707_v55 = vmul.f32 -1.442695, %v874_v53 }
 0x1d9   : > { %v967_v56 = vadd.f32 1.0, %v2049_v54  ;;  %v956_v16 = vpop.f32.mrf.mxu3 }
 0x1da   : > { %2050 = vpow2.f32 %v1707_v55  ;;  %v960_v22 = vadd.f32 %v956_v16, %v786_v15 }
 0x1db   : > { %2052 = vrcp.f32 %v967_v56  ;;  %v980_v3 = vand.u32 2147483648, %v967_v56  ;;  %vm974_vm1 = vweird.f32 %v967_v56  ;;  %v978_v4 = vand.u32 2147483647, %v967_v56 }
 0x1dd   : > { %v981_v8 = vor.u32 1.1754944e-38, %v980_v3  ;;  %vm979_vm3 = vcmp.eq.f32.partialorder %v978_v4, 8.507059e+37 }
 0x1e0   : > { %v2051_v57 = vpop.eup %2050 }
 0x1e1   : > { %v2053_v58 = vpop.eup %2052  ;;  %v968_v59 = vadd.f32 1.0, %v2051_v57 }
 0x1e2   : > { %v970_v60 = vmul.f32 %v2053_v58, %v967_v56  ;;  %vm975_vm0 = vweird.f32 %v2053_v58 }
 0x1e3   : > { %2054 = vrcp.f32 %v968_v59  ;;  %vm976_vm2 = vmor %vm974_vm1, %vm975_vm0  ;;  %v995_v9 = vand.u32 2147483648, %v968_v59  ;;  %v993_v11 = vand.u32 2147483647, %v968_v59  ;;  %vm989_vm5 = vweird.f32 %v968_v59 }
 0x1e4   : > { %v971_v61 = vsub.f32 1.0, %v970_v60 }
 0x1e5   : > { %v996_v14 = vor.u32 1.1754944e-38, %v995_v9  ;;  %vm994_vm7 = vcmp.eq.f32.partialorder %v993_v11, 8.507059e+37 }
 0x1e6   : > { %v972_v62 = vmul.f32 %v2053_v58, %v971_v61 }
 0x1e8   : > { %v973_v1 = vadd.f32 %v2053_v58, %v972_v62 }
 0x1e9   : > { %v2055_v2 = vpop.eup %2054 }
 0x1ea   : > { %v985_v5 = vmul.f32 %v2055_v2, %v968_v59  ;;  %v977_v6 = vsel %vm976_vm2, %v2053_v58, %v973_v1  ;;  %vm990_vm4 = vweird.f32 %v2055_v2 }
 0x1eb   : > { %v982_v12 = vsel %vm979_vm3, %v981_v8, %v977_v6  ;;  %vm991_vm6 = vmor %vm989_vm5, %vm990_vm4 }
 0x1ec   : > { %v986_v7 = vsub.f32 1.0, %v985_v5  ;;  %v999_v17 = vmul.f32 %v982_v12, %v873_v45 }
 0x1ee   : > { %v987_v10 = vmul.f32 %v2055_v2, %v986_v7  ;;  %v1001_v23 = vmul.f32 %v999_v17, %v959_v19 }
 0x1f0   : > { %v988_v13 = vadd.f32 %v2055_v2, %v987_v10 }
 0x1f2   : > { %v992_v18 = vsel %vm991_vm6, %v2055_v2, %v988_v13 }
 0x1f3   : > { %v997_v20 = vsel %vm994_vm7, %v996_v14, %v992_v18 }
 0x1f4   : > { %v1000_v21 = vmul.f32 %v997_v20, %v874_v53 }
 0x1f6   : > { %v1002_v24 = vmul.f32 %v1000_v21, %v960_v22 }
 0x1f8   : > { %v1003_v25 = vpack.c.bf16 %v1002_v24, %v1001_v23 }
 0x1fa   : > { %1078 = vmatmul.bf16.vlgmr.msrb.gmra.mxu0 %v1003_v25  ;;  %1162 = vmatmul.bf16.vlgmr.msrb.gmra.mxu1 %v1003_v25 }
 0x277   : > { %v1079_v28 = vpop.f32.mrf.mxu0  ;;  %v1163_v29 = vpop.f32.mrf.mxu1 }
 0x278   : > { %v1084_v30 = vadd.f32 %v1079_v28, %v1004_v26  ;;  %v1168_v31 = vadd.f32 %v1163_v29, %v1088_v27 }
 0x27a   : > { %1086 = vst [vmem:[#allocation3] sm:$0xff] %v1084_v30 }
 0x27b   : > { %1170 = vst [vmem:[#allocation4 + $0x8] sm:$0xff] %v1168_v31 }
 0x27f   : > { %v1081_v34 = vpop.f32.mrf.mxu0  ;;  %v1165_v35 = vpop.f32.mrf.mxu1  ;;  %1175 = sbr.rel (%p1772_p12) target bundleno = 815 (0x32f), region = 84 }
 0x280   : > { %v1085_v36 = vadd.f32 %v1081_v34, %v1005_v32  ;;  %v1169_v37 = vadd.f32 %v1165_v35, %v1089_v33 }
 0x282   : > { %1087 = vst [vmem:[#allocation3 + $0x8] sm:$0xff] %v1085_v36 }
 0x283   : > { %1171 = vst [vmem:[#allocation4] sm:$0xff] %v1169_v37 }
 0x284   : > { %v1890_v38 = vld [vmem:[#allocation15 + $0x38] sm:$0xff]  ;;  %v1889_v39 = vld [vmem:[#allocation15 + $0x30] sm:$0xff]  ;;  %v1888_v40 = vld [vmem:[#allocation15 + $0x28] sm:$0xff] }
 0x285   : > { %1245 = vmatpush.bf16.msra.mxu0 %v1890_v38  ;;  %v1887_v41 = vld [vmem:[#allocation15 + $0x20] sm:$0xff]  ;;  %v1886_v42 = vld [vmem:[#allocation15 + $0x18] sm:$0xff]  ;;  %v1885_v43 = vld [vmem:[#allocation15 + $0x10] sm:$0xff] }
 0x286   : > { %v1884_v44 = vld [vmem:[#allocation15 + $0x8] sm:$0xff]  ;;  %v1883_v45 = vld [vmem:[#allocation15] sm:$0xff]  ;;  %v1176_v50 = vld [vmem:[#allocation3] sm:$0xff] }
 0x287   : > { %v1178_v46 = vld [vmem:[#allocation4 + $0x8] sm:$0xff] }
 0x289   : > { %1246 = vmatpush.bf16.msra.mxu0 %v1889_v39  ;;  %v1177_v51 = vld [vmem:[#allocation3 + $0x8] sm:$0xff] }
 0x28a   : > { %v1179_v47 = vld [vmem:[#allocation4] sm:$0xff] }
 0x28b   : > { %v1180_v48 = vpack.c.bf16 %v1179_v47, %v1178_v46 }
 0x28d   : > { %1247 = vmatpush.bf16.msra.mxu0 %v1888_v40 }
 0x291   : > { %1248 = vmatpush.bf16.msra.mxu0 %v1887_v41 }
 0x295   : > { %1249 = vmatpush.bf16.msra.mxu0 %v1886_v42 }
 0x299   : > { %1250 = vmatpush.bf16.msra.mxu0 %v1885_v43 }
 0x29d   : > { %1251 = vmatpush.bf16.msra.mxu0 %v1884_v44 }
 0x2a1   : > { %1252 = vmatpush.bf16.msra.mxu0 %v1883_v45 }
 0x2a4   : > { %1253 = vmatmul.bf16.vlgmr.msra.gmra.mxu0 %v1180_v48 }
 0x321   : > { %v1254_v49 = vpop.f32.mrf.mxu0 }
 0x322   : > { %v1259_v53 = vadd.f32 %v1254_v49, %v1176_v50 }
 0x329   : > { %v1256_v52 = vpop.f32.mrf.mxu0 }
 0x32a   : > { %v1260_v54 = vadd.f32 %v1256_v52, %v1177_v51 }
 0x32c   : > { %v1895_v55 = vpack.c.bf16 %v1260_v54, %v1259_v53 }
 0x32e   : > { %1896 = vst [vmem:[%s502_s23] sm:$0xff] %v1895_v55  }
 0x32f PF: > { %s2952_s5 = sld [smem:[#allocation27_spill]]  ;;  %s1278_s6 = sshll.u32 %s502_s23, 4  ;;  %s1279_s6 = int_to_ptr.vmem [resolvable:$true] %s1278_s6 }
 0x330   : > { %s2954_s13 = sld [smem:[#allocation43_spill]]  ;;  %s1266_s21 = scalar_lea.sflag [#allocation7], %s399_s22 }
 0x335   : > { %s1891_s20 = sshll.u32 %s2952_s5, 3 }
 0x336   : > { %s1277_s0 = scalar_lea.hbm %s2954_s13, %s1891_s20  ;;  %s2286_s3 = scalar_lea.hbm %s2954_s13, 16 }
 0x337   : > { %s1280_s2 = sshll.u32 %s1277_s0, 4  ;;  %s1281_s2 = int_to_ptr.hbm [resolvable:$true] %s1280_s2 }
 0x338   : > { %s2280_s9 = sshra.s32 %s1281_s2, 4  ;;  %s2281_s9 = int_to_ptr.hbm [resolvable:$true] %s2280_s9 }
 0x339   : > { %s2282_s14 = scalar_lea.hbm %s2281_s9, 8  ;;  %p2287_p2 = scmp.lt.s32.totalorder %s2281_s9, %s2954_s13 }
 0x33a   : > { %p2283_p7 = scmp.ne.s32.totalorder %s2281_s9, %s2282_s14  ;;  %p2288_p9 = scmp.lt.s32.totalorder %s2286_s3, %s2282_s14 }
 0x33c   : > { %p2284_p10 = pnand %p2283_p7, %p2635_p1  ;;  %p2289_p4 = por %p2288_p9, %p2287_p2 }
 0x33e   : > { %p2285_p11 = pneg %p2284_p10 }
 0x340   : > { %p2290_p6 = pnand %p2289_p4, %p2285_p11 }
 0x342   : > { %2293 = shalt.err (!%p2290_p6)
}
 0x343   : > { %s2418_s22 = smov 64   ;;  %s2419_s7 = smov 4  }
 0x344   : > { %1915 = dma.vmem_to_hbm [thread:$0]  (%p2635_p1), %s1279_s6, 128, %s1281_s2, %s1266_s21, %s2418_s22, %s2418_s22, %s2419_s7  }
 0x345 PF: > { %s2955_s17 = sld [smem:[#allocation25_spill]]  ;;  %p1949_p8 = scmp.ge.s32.totalorder %s2408_s11, 2 }
 0x347   : > { %p1941_p5 = pnand %p1949_p8, %p2639_p0 }
 0x349   : > { %p1942_p13 = pneg %p1941_p5 }
 0x34b   : > { %s1295_s10 = sand.u32 1, %s2955_s17  }
 0x34c   : > { %s1296_s19 = scalar_lea.sflag [#allocation7], %s1295_s10 }
 0x34d   : > { %2363 = dma.done.wait (%p1942_p13), %s1296_s19, 128  }
 0x34e   : > { %2365 = vsyncadd (%p1942_p13), %s1296_s19, 4294967168  ;;  %s27_s11 = sadd.s32 1, %s2408_s11   ;;  %s2956_s24 = sld [smem:[#allocation24_spill]] }
 0x34f   : > { %p24_p3 = scmp.ge.s32.totalorder %s27_s11, 6   ;;  %s2957_s23 = sld [smem:[#allocation31_spill]] }
 0x350   : > { %s2958_s15 = sld [smem:[#allocation36_spill]]  ;;  %s2963_s25 = smov %s2376_s26 }
 0x351   : > { %s2959_s30 = sld [smem:[#allocation28_spill]]  ;;  %s2965_s27 = smov %s2384_s28 }
 0x352   : > { %s2960_s8 = sld [smem:[#allocation29_spill]]  ;;  %s2966_s28 = smov %s2388_s29 }
 0x353   : > { %s2961_s9 = sld [smem:[#allocation30_spill]]  ;;  %26 = sbr.rel (!%p24_p3) target bundleno = 20 (0x14), region = 155 }
 0x354   : > { %s2962_s10 = sld [smem:[#allocation34_spill]] }
 0x355   : > { %s2964_s26 = smov %s2957_s23 }
 0x356   : > { %s2967_s29 = smov %s2958_s15 }
 0x358   :  { %1302 = vsyncpa [#allocation6], 1 }
 0x359   :  { %1304 = vsyncpa [#allocation6 + $0x1], 1 }
 0x35a   :  { %1305 = vsyncpa [#allocation9], 1 }
 0x35b   :  { %1307 = vsyncpa [#allocation9 + $0x1], 1 }
 0x35c   :  { %1308 = vsyncpa [#allocation12], 1 }
 0x35d   :  { %1309 = vsyncpa [#allocation7], 1 }
 0x35e   :  { %1311 = vsyncpa [#allocation7 + $0x1], 1 }

</bundles_post_ra>
